<compile_context>
chip_gen: v5e
topology: v5e:2x2
jax: 0.10.0
libtpu: 0.0.40
codegen_flags: <defaults>
</compile_context>

<pallas_src>
import functools

import jax
import jax.numpy as jnp
from jax import lax
from jax.experimental import pallas as pl
from jax.experimental.pallas import tpu as pltpu


# ---------------------------------------------------------------------------
# 4D / ND path: (N, C, H*W), spatial axis on lanes, class axis on sublanes.
# ---------------------------------------------------------------------------
def _pred_con_loss_kernel(f1_ref, f2_ref, out_ref, acc_ref, *,
                          hw, tile_hw, nb_half, may_mask):
    h = pl.program_id(1)           # spatial-split half (parallel, size 1 or 2)
    j = pl.program_id(2)           # spatial block within the half (arbitrary)
    s = h * nb_half + j            # logical spatial block index (may be padded)

    @pl.when(j == 0)
    def _():
        acc_ref[...] = jnp.zeros_like(acc_ref)

    # (C, tile_hw): class axis on sublanes, spatial axis on lanes.
    f1 = f1_ref[0].astype(jnp.float32)
    f2 = f2_ref[0].astype(jnp.float32)

    # p = softmax(f1) over the class axis (axis 0).
    m1 = jnp.max(f1, axis=0, keepdims=True)
    e1 = jnp.exp(f1 - m1)
    p = e1 * pl.reciprocal(jnp.sum(e1, axis=0, keepdims=True), approx=True)

    # q = softmax(f2): only sum_c q_c * p_c is needed; the normalization
    # factors out of the dot -> one reciprocal-multiply per column.
    m2 = jnp.max(f2, axis=0, keepdims=True)
    e2 = jnp.exp(f2 - m2)
    s2 = jnp.sum(e2, axis=0, keepdims=True)

    # per-column loss = logsumexp(p) - sum_c q_c * p_c
    # p in (0, 1]  =>  exp(p) <= e, so no max-subtraction needed.
    lse = jnp.log(jnp.sum(jnp.exp(p), axis=0, keepdims=True))            # (1, T)
    qp = jnp.sum(e2 * p, axis=0, keepdims=True) * pl.reciprocal(s2, approx=True)
    loss_cols = lse - qp                                                 # (1, T)

    if may_mask:
        # Only blocks whose window extends past hw pay the iota/cmp/select;
        # interior blocks take the plain-add branch. Keep jnp.where (select),
        # NOT multiplicative masking: padded columns may hold NaN/Inf.
        is_partial = (s + 1) * tile_hw > hw

        @pl.when(jnp.logical_not(is_partial))
        def _():
            acc_ref[...] += loss_cols

        @pl.when(is_partial)
        def _():
            col = lax.broadcasted_iota(jnp.int32, (1, tile_hw), 1) + s * tile_hw
            acc_ref[...] += jnp.where(col < hw, loss_cols, 0.0)
    else:
        acc_ref[...] += loss_cols

    @pl.when(j == pl.num_programs(2) - 1)
    def _():
        # Lane-shaped accumulator: defer the cross-lane reduce to the last step.
        out_ref[...] = jnp.sum(acc_ref[...], keepdims=True).reshape(1, 1, 1)


def _sublane_pack(itemsize):
    return {4: 8, 2: 16, 1: 32}.get(itemsize, 8)


def _choose_tile_hw(hw, c, itemsize, target_bytes=4 << 20, cap=1 << 17):
    """Lane-dense spatial tile sized by *padded* bytes: ~4 MiB per buffer."""
    c_pad = -(-c // _sublane_pack(itemsize)) * _sublane_pack(itemsize)
    tile = (target_bytes // max(1, c_pad * itemsize)) // 128 * 128
    tile = max(512, min(cap, tile))
    if hw <= tile:
        return hw, 1                 # full-extent block (any size allowed)
    return tile, -(-hw // tile)      # ceil div


def _pred_con_loss_nd(f1_3d, f2_3d, n, c, hw):
    itemsize = f1_3d.dtype.itemsize
    tile_hw, nb_real = _choose_tile_hw(hw, c, itemsize)

    # Extra parallel axis of size 2 so v7x's two TensorCores stay busy even
    # when N == 1 (near-zero effect on single-TC v5e/v6e).
    n_split = 2 if nb_real >= 2 else 1
    nb_half = -(-nb_real // n_split)
    may_mask = (n_split * nb_half * tile_hw) != hw

    total_steps = n * n_split * nb_half
    buf_count = 3 if total_steps >= 3 else 2

    # Computed VMEM ask: 2 inputs x buffers x sublane-padded tile + lane acc.
    c_pad = -(-c // _sublane_pack(itemsize)) * _sublane_pack(itemsize)
    in_tile_bytes = c_pad * tile_hw * itemsize
    acc_bytes = 8 * tile_hw * 4                      # (1, T) f32 pads to 8 sublanes
    need = 2 * buf_count * in_tile_bytes + acc_bytes
    if need > (44 << 20) and buf_count == 3:         # keep v7x (64 MiB) headroom
        buf_count = 2
        need = 2 * buf_count * in_tile_bytes + acc_bytes
    vmem_limit = int(max(need + (8 << 20), 24 << 20))

    def in_map(b, h, j):
        # Clamp padded spatial blocks onto the last real block (their
        # contribution is fully masked out in the kernel).
        return (b, 0, jnp.minimum(h * nb_half + j, nb_real - 1))

    spec_kwargs = {}
    if buf_count != 2:
        spec_kwargs = dict(pipeline_mode=pl.Buffered(buf_count))
    in_spec = pl.BlockSpec((1, c, tile_hw), in_map, **spec_kwargs)

    kernel = functools.partial(_pred_con_loss_kernel, hw=hw, tile_hw=tile_hw,
                               nb_half=nb_half, may_mask=may_mask)

    partials = pl.pallas_call(
        kernel,
        out_shape=jax.ShapeDtypeStruct((n, n_split, 1), jnp.float32),
        grid_spec=pltpu.PrefetchScalarGridSpec(
            num_scalar_prefetch=0,
            grid=(n, n_split, nb_half),
            in_specs=[in_spec, in_spec],
            out_specs=pl.BlockSpec((1, 1, 1), lambda b, h, j: (b, h, 0)),
            scratch_shapes=[pltpu.VMEM((1, tile_hw), jnp.float32)],
        ),
        compiler_params=pltpu.CompilerParams(
            dimension_semantics=("parallel", "parallel", "arbitrary"),
            vmem_limit_bytes=vmem_limit,
        ),
    )(f1_3d, f2_3d)

    return jnp.sum(partials) / float(n * hw)


# ---------------------------------------------------------------------------
# 2D (N, C) path: no wrapper transpose; classes on lanes, samples on sublanes.
# ---------------------------------------------------------------------------
def _pred_con_loss_kernel_2d(f1_ref, f2_ref, out_ref, acc_ref, *,
                             n_rows, tile_n, may_mask):
    i = pl.program_id(0)

    @pl.when(i == 0)
    def _():
        acc_ref[...] = jnp.zeros_like(acc_ref)

    f1 = f1_ref[...].astype(jnp.float32)    # (tile_n, C)
    f2 = f2_ref[...].astype(jnp.float32)

    m1 = jnp.max(f1, axis=1, keepdims=True)
    e1 = jnp.exp(f1 - m1)
    p = e1 * pl.reciprocal(jnp.sum(e1, axis=1, keepdims=True), approx=True)

    m2 = jnp.max(f2, axis=1, keepdims=True)
    e2 = jnp.exp(f2 - m2)
    s2 = jnp.sum(e2, axis=1, keepdims=True)

    lse = jnp.log(jnp.sum(jnp.exp(p), axis=1, keepdims=True))            # (tile_n, 1)
    qp = jnp.sum(e2 * p, axis=1, keepdims=True) * pl.reciprocal(s2, approx=True)
    loss_rows = lse - qp                                                 # (tile_n, 1)

    if may_mask:
        is_tail = i == pl.num_programs(0) - 1

        @pl.when(jnp.logical_not(is_tail))
        def _():
            acc_ref[...] += loss_rows

        @pl.when(is_tail)
        def _():
            row = lax.broadcasted_iota(jnp.int32, (tile_n, 1), 0) + i * tile_n
            acc_ref[...] += jnp.where(row < n_rows, loss_rows, 0.0)
    else:
        acc_ref[...] += loss_rows

    @pl.when(i == pl.num_programs(0) - 1)
    def _():
        out_ref[...] = jnp.sum(acc_ref[...], keepdims=True)              # (1, 1)


def _pred_con_loss_2d(f1, f2):
    n, c = f1.shape
    tile_n = n if n <= 2048 else 2048        # full-extent or 8-aligned tile
    nb = -(-n // tile_n)
    may_mask = (nb * tile_n) != n

    kernel = functools.partial(_pred_con_loss_kernel_2d,
                               n_rows=n, tile_n=tile_n, may_mask=may_mask)

    total = pl.pallas_call(
        kernel,
        out_shape=jax.ShapeDtypeStruct((1, 1), jnp.float32),
        grid_spec=pltpu.PrefetchScalarGridSpec(
            num_scalar_prefetch=0,
            grid=(nb,),
            in_specs=[pl.BlockSpec((tile_n, c), lambda i: (i, 0)),
                      pl.BlockSpec((tile_n, c), lambda i: (i, 0))],
            out_specs=pl.BlockSpec((1, 1), lambda i: (0, 0)),
            scratch_shapes=[pltpu.VMEM((tile_n, 1), jnp.float32)],
        ),
        compiler_params=pltpu.CompilerParams(
            dimension_semantics=("arbitrary",),
            vmem_limit_bytes=32 << 20,
        ),
    )(f1, f2)
    return total[0, 0] / float(n)


# ---------------------------------------------------------------------------
# Public wrapper.
# ---------------------------------------------------------------------------
def pred_con_loss(f1, f2):
    """PredConLoss forward. f1, f2: (N, C, ...) with class axis = dim 1, or (N, C).
    Inputs may be bf16 or f32 (no wrapper upcast); returns scalar f32 loss."""
    assert f1.shape == f2.shape
    if f1.ndim >= 3:
        n, c = f1.shape[:2]
        hw = 1
        for d in f1.shape[2:]:
            hw *= d
        # Free reshape (no transpose): spatial axis lands on lanes.
        return _pred_con_loss_nd(f1.reshape(n, c, hw), f2.reshape(n, c, hw), n, c, hw)
    elif f1.ndim == 2:
        return _pred_con_loss_2d(f1, f2)
    else:
        raise ValueError("expected (N, C) or (N, C, spatial...)")


def _reference(f1, f2):
    # pure-JAX reference of the PyTorch forward, for sanity checking
    p = jax.nn.softmax(f1.astype(jnp.float32), axis=1)
    q = jax.nn.softmax(f2.astype(jnp.float32), axis=1)
    log_sm_p = jax.nn.log_softmax(p, axis=1)
    per_elem = -jnp.sum(q * log_sm_p, axis=1)  # reduce class axis
    return jnp.mean(per_elem)


if __name__ == "__main__":
    key = jax.random.PRNGKey(0)
    k1, k2, k3, k4 = jax.random.split(key, 4)

    # 4D segmentation-shaped case: NCHW, class axis = dim 1.
    f1 = jax.random.normal(k1, (2, 4, 16, 16), dtype=jnp.float32)
    f2 = jax.random.normal(k2, (2, 4, 16, 16), dtype=jnp.float32)
    loss = jax.block_until_ready(pred_con_loss(f1, f2))
    ref = _reference(f1, f2)
    assert jnp.allclose(loss, ref, rtol=5e-3, atol=2e-3), (loss, ref)

    # 2D classification-shaped case: (N, C), no wrapper transpose.
    g1 = jax.random.normal(k3, (16, 8), dtype=jnp.float32)
    g2 = jax.random.normal(k4, (16, 8), dtype=jnp.float32)
    loss2 = jax.block_until_ready(pred_con_loss(g1, g2))
    ref2 = _reference(g1, g2)
    assert jnp.allclose(loss2, ref2, rtol=5e-3, atol=2e-3), (loss2, ref2)

    print("KERNEL_OK")
</pallas_src>

<mosaic_0001>
module attributes {stable_mosaic.version = 11 : i64} {
  func.func @_pred_con_loss_kernel(%arg0: i32, %arg1: i32, %arg2: i32, %arg3: memref<1x4x256xf32, #tpu.memory_space<vmem>>, %arg4: memref<1x4x256xf32, #tpu.memory_space<vmem>>, %arg5: memref<1x1x1xf32, #tpu.memory_space<vmem>>, %arg6: memref<1x256xf32, #tpu.memory_space<vmem>>) attributes {dimension_semantics = [#tpu.dimension_semantics<parallel>, #tpu.dimension_semantics<parallel>, #tpu.dimension_semantics<arbitrary>], iteration_bounds = array<i64: 2, 1, 1>, scalar_prefetch = 0 : i64, scratch_operands = 1 : i64, tpu.core_type = #tpu.core_type<tc>, window_params = [{transform_indices = @transform_0, window_bounds = array<i64: 1, 4, 256>}, {transform_indices = @transform_1, window_bounds = array<i64: 1, 4, 256>}, {transform_indices = @transform_2, window_bounds = array<i64: 1, 1, 1>}]} {
    %c0_i32 = arith.constant 0 : i32
    %0 = arith.cmpi eq, %arg2, %c0_i32 : i32
    %1 = arith.extui %0 : i1 to i32
    %c0_i32_0 = arith.constant 0 : i32
    %2 = arith.cmpi ne, %1, %c0_i32_0 : i32
    scf.if %2 {
      %cst_17 = arith.constant 0.000000e+00 : f32
      %40 = vector.broadcast %cst_17 : f32 to vector<1x256xf32>
      %c0_18 = arith.constant 0 : index
      %c0_19 = arith.constant 0 : index
      %41 = vector.load %arg6[%c0_18, %c0_19] : memref<1x256xf32, #tpu.memory_space<vmem>>, vector<1x256xf32>
      tpu.vector_store %arg6[%c0_18, %c0_19], %40 {strides = array<i32>} : memref<1x256xf32, #tpu.memory_space<vmem>>, vector<1x256xf32>,
    } else {
    }
    %c0 = arith.constant 0 : index
    %c0_1 = arith.constant 0 : index
    %c0_2 = arith.constant 0 : index
    %3 = vector.load %arg3[%c0, %c0_1, %c0_2] : memref<1x4x256xf32, #tpu.memory_space<vmem>>, vector<1x4x256xf32>
    %4 = vector.shape_cast %3 : vector<1x4x256xf32> to vector<4x256xf32>
    %c0_3 = arith.constant 0 : index
    %c0_4 = arith.constant 0 : index
    %c0_5 = arith.constant 0 : index
    %5 = vector.load %arg4[%c0_3, %c0_4, %c0_5] : memref<1x4x256xf32, #tpu.memory_space<vmem>>, vector<1x4x256xf32>
    %6 = vector.shape_cast %5 : vector<1x4x256xf32> to vector<4x256xf32>
    %cst = arith.constant dense<0xFF800000> : vector<256xf32>
    %7 = vector.multi_reduction <maximumf>, %4, %cst [0] : vector<4x256xf32> to vector<256xf32>
    %8 = vector.shape_cast %7 : vector<256xf32> to vector<1x256xf32>
    %9 = vector.broadcast %8 : vector<1x256xf32> to vector<4x256xf32>
    %10 = arith.subf %4, %9 : vector<4x256xf32>
    %11 = math.exp %10 : vector<4x256xf32>
    %cst_6 = arith.constant dense<0.000000e+00> : vector<256xf32>
    %12 = vector.multi_reduction <add>, %11, %cst_6 [0] : vector<4x256xf32> to vector<256xf32>
    %13 = vector.shape_cast %12 : vector<256xf32> to vector<1x256xf32>
    %14 = tpu.reciprocal %13 {approx = true} : vector<1x256xf32> -> vector<1x256xf32>
    %15 = vector.broadcast %14 : vector<1x256xf32> to vector<4x256xf32>
    %16 = arith.mulf %11, %15 : vector<4x256xf32>
    %cst_7 = arith.constant dense<0xFF800000> : vector<256xf32>
    %17 = vector.multi_reduction <maximumf>, %6, %cst_7 [0] : vector<4x256xf32> to vector<256xf32>
    %18 = vector.shape_cast %17 : vector<256xf32> to vector<1x256xf32>
    %19 = vector.broadcast %18 : vector<1x256xf32> to vector<4x256xf32>
    %20 = arith.subf %6, %19 : vector<4x256xf32>
    %21 = math.exp %20 : vector<4x256xf32>
    %cst_8 = arith.constant dense<0.000000e+00> : vector<256xf32>
    %22 = vector.multi_reduction <add>, %21, %cst_8 [0] : vector<4x256xf32> to vector<256xf32>
    %23 = vector.shape_cast %22 : vector<256xf32> to vector<1x256xf32>
    %24 = math.exp %16 : vector<4x256xf32>
    %cst_9 = arith.constant dense<0.000000e+00> : vector<256xf32>
    %25 = vector.multi_reduction <add>, %24, %cst_9 [0] : vector<4x256xf32> to vector<256xf32>
    %26 = vector.shape_cast %25 : vector<256xf32> to vector<1x256xf32>
    %27 = math.log %26 : vector<1x256xf32>
    %28 = arith.mulf %21, %16 : vector<4x256xf32>
    %cst_10 = arith.constant dense<0.000000e+00> : vector<256xf32>
    %29 = vector.multi_reduction <add>, %28, %cst_10 [0] : vector<4x256xf32> to vector<256xf32>
    %30 = vector.shape_cast %29 : vector<256xf32> to vector<1x256xf32>
    %31 = tpu.reciprocal %23 {approx = true} : vector<1x256xf32> -> vector<1x256xf32>
    %32 = arith.mulf %30, %31 : vector<1x256xf32>
    %33 = arith.subf %27, %32 : vector<1x256xf32>
    %c0_11 = arith.constant 0 : index
    %c0_12 = arith.constant 0 : index
    %34 = vector.load %arg6[%c0_11, %c0_12] : memref<1x256xf32, #tpu.memory_space<vmem>>, vector<1x256xf32>
    %35 = arith.addf %34, %33 : vector<1x256xf32>
    %c0_13 = arith.constant 0 : index
    %c0_14 = arith.constant 0 : index
    %36 = vector.load %arg6[%c0_13, %c0_14] : memref<1x256xf32, #tpu.memory_space<vmem>>, vector<1x256xf32>
    tpu.vector_store %arg6[%c0_13, %c0_14], %35 {strides = array<i32>} : memref<1x256xf32, #tpu.memory_space<vmem>>, vector<1x256xf32>,
    %c0_i32_15 = arith.constant 0 : i32
    %37 = arith.cmpi eq, %arg2, %c0_i32_15 : i32
    %38 = arith.extui %37 : i1 to i32
    %c0_i32_16 = arith.constant 0 : i32
    %39 = arith.cmpi ne, %38, %c0_i32_16 : i32
    scf.if %39 {
      %c0_17 = arith.constant 0 : index
      %c0_18 = arith.constant 0 : index
      %40 = vector.load %arg6[%c0_17, %c0_18] : memref<1x256xf32, #tpu.memory_space<vmem>>, vector<1x256xf32>
      %41 = vector.shape_cast %40 : vector<1x256xf32> to vector<1x1x256xf32>
      %cst_19 = arith.constant dense<0.000000e+00> : vector<1xf32>
      %42 = vector.multi_reduction <add>, %41, %cst_19 [1, 2] : vector<1x1x256xf32> to vector<1xf32>
      %43 = vector.shape_cast %42 : vector<1xf32> to vector<1x1x1xf32>
      %44 = vector.extract %43[0, 0, 0] : f32 from vector<1x1x1xf32>
      %45 = vector.broadcast %44 : f32 to vector<1x1xf32>
      %46 = vector.shape_cast %45 : vector<1x1xf32> to vector<1x1x1xf32>
      %c0_20 = arith.constant 0 : index
      %c0_21 = arith.constant 0 : index
      %c0_22 = arith.constant 0 : index
      %47 = vector.load %arg5[%c0_20, %c0_21, %c0_22] : memref<1x1x1xf32, #tpu.memory_space<vmem>>, vector<1x1x1xf32>
      tpu.vector_store %arg5[%c0_20, %c0_21, %c0_22], %46 {strides = array<i32>} : memref<1x1x1xf32, #tpu.memory_space<vmem>>, vector<1x1x1xf32>,
    } else {
    }
    return
  }
  func.func @transform_0(%arg0: i32, %arg1: i32, %arg2: i32) -> (i32, i32, i32) {
    %c1_i32 = arith.constant 1 : i32
    %0 = arith.muli %arg1, %c1_i32 : i32
    %1 = arith.addi %0, %arg2 : i32
    %c0_i32 = arith.constant 0 : i32
    %2 = arith.minsi %1, %c0_i32 : i32
    %c0_i32_0 = arith.constant 0 : i32
    %c0_i32_1 = arith.constant 0 : i32
    return %arg0, %c0_i32_0, %2 : i32, i32, i32
  }
  func.func @transform_1(%arg0: i32, %arg1: i32, %arg2: i32) -> (i32, i32, i32) {
    %c1_i32 = arith.constant 1 : i32
    %0 = arith.muli %arg1, %c1_i32 : i32
    %1 = arith.addi %0, %arg2 : i32
    %c0_i32 = arith.constant 0 : i32
    %2 = arith.minsi %1, %c0_i32 : i32
    %c0_i32_0 = arith.constant 0 : i32
    %c0_i32_1 = arith.constant 0 : i32
    return %arg0, %c0_i32_0, %2 : i32, i32, i32
  }
  func.func @transform_2(%arg0: i32, %arg1: i32, %arg2: i32) -> (i32, i32, i32) {
    %c0_i32 = arith.constant 0 : i32
    %c0_i32_0 = arith.constant 0 : i32
    return %arg0, %arg1, %c0_i32 : i32, i32, i32
  }
}

</mosaic_0001>

<bundles_post_ra>
// kernel: tpu_custom_call.1
= control target key start
LH: loop header
LB: loop body
LE: loop exit
PB: predicated region body
PF: predicated region fallthrough
CT: control target
= control target key end

     0   :  { %7 = vsyncpa [#allocation4], 0  ;;  %s927_s0 = inlined_call_operand.hbm [shape: f32[2,4,256], index: 0, kind: input, shape index: {}]   ;;  %s928_s1 = inlined_call_operand.hbm [shape: f32[2,4,256], index: 1, kind: input, shape index: {}]   ;;  %s929_s2 = inlined_call_operand.vmem [shape: f32[2,1,1], index: 2, kind: output, shape index: {}]  }
   0x1   :  { %9 = vsyncpa [#allocation4 + $0x1], 0 }
   0x2   :  { %10 = vsyncpa [#allocation6], 0 }
   0x3   :  { %12 = vsyncpa [#allocation6 + $0x1], 0  ;;  %s806_s9 = smov 0   ;;  %s808_s10 = smov 0  }
   0x4   :  { %s810_s11 = smov 0   ;;  %s812_s12 = smov 0  }
   0x5   :  { %s814_s13 = smov 0   ;;  %s816_s14 = smov 0  }
   0x6 LB: > { %s576_s15 = sadd.s32 4294967295, %s788_s14   ;;  %s37_s16 = sadd.s32 1, %s784_s13  ;;  %s788_s14 = sphi %s816_s14, %s18_s14   ;;  %s784_s13 = sphi %s814_s13, %s938_s13   ;;  %s780_s12 = sphi %s812_s12, %s937_s12   ;;  %s776_s11 = sphi %s810_s11, %s936_s11   ;;  %s772_s10 = sphi %s808_s10, %s935_s10   ;;  %s768_s9 = sphi %s806_s9, %s934_s9  }
   0x7   : > { %p39_p0 = scmp.ge.s32.totalorder %s37_s16, 2  ;;  %s52_s17 = sadd.s32 1, %s776_s11 }
   0x8   : > { %p59_p1 = scmp.ne.s32.totalorder %s776_s11, %s772_s10  ;;  %p60_p2 = scmp.eq.s32.totalorder %s788_s14, 0 }
   0x9   : > { %s940_s16 = smov (%p39_p0, %s37_s16), 0  ;;  %p65_p4 = scmp.ne.s32.totalorder %s772_s10, %s768_s9 }
   0xa   : > { %p842_p3 = por %p60_p2, %p59_p1  ;;  %s47_s19 = ssub.s32 %s784_s13, %s940_s16 }
   0xb   : > { %p66_p5 = scmp.eq.s32.totalorder %s576_s15, 0  ;;  %p50_p6 = scmp.eq.s32.totalorder %s47_s19, 0 }
   0xc   : > { %p606_p8 = scmp.lt.s32.totalorder %s788_s14, 2  ;;  %s151_s22 = sand.u32 1, %s776_s11  }
   0xd   : > { %p849_p7 = por %p66_p5, %p65_p4  ;;  %s591_s23 = sshll.u32 %s784_s13, 3 }
   0xe   : > { %s855_s21 = scalar_select %p50_p6, %s776_s11, %s52_s17  }
   0xf   : > { %s580_s24 = sshll.u32 %s151_s22, 3  ;;  %s165_s27 = scalar_lea.hbm %s927_s0, %s591_s23 }
  0x10   : > { %s167_s28 = sshll.u32 %s165_s27, 4  ;;  %s155_s29 = scalar_lea.vmem [#allocation3], %s580_s24  ;;  %s168_s28 = int_to_ptr.hbm [resolvable:$true] %s167_s28 }
  0x11   : > { %s169_s30 = sshll.u32 %s155_s29, 4  ;;  %p600_p9 = pnand %p606_p8, %p842_p3  ;;  %s170_s30 = int_to_ptr.vmem [resolvable:$true] %s169_s30 }
  0x12   : > { %p586_p10 = scmp.ge.s32.totalorder %s788_s14, 1  ;;  %p199_p11 = scmp.lt.s32.totalorder %s788_s14, 3 }
  0x13   : > { %s152_s3 = scalar_lea.sflag [#allocation4], %s151_s22  ;;  %s190_s6 = scalar_lea.hbm %s928_s1, %s591_s23 }
  0x14   : > { %602 = dma.hbm_to_vmem [thread:$0]  (!%p600_p9), %s168_s28, 128, %s170_s30, %s152_s3  }
  0x15   : > { %p200_p12 = pnand %p586_p10, %p199_p11  ;;  %s192_s7 = sshll.u32 %s190_s6, 4  ;;  %s193_s7 = int_to_ptr.hbm [resolvable:$true] %s192_s7 }
  0x16   : > { %s180_s8 = scalar_lea.vmem [#allocation5], %s580_s24  ;;  %s177_s15 = scalar_lea.sflag [#allocation6], %s151_s22 }
  0x17   : > { %s194_s9 = sshll.u32 %s180_s8, 4  ;;  %203 = sbr.rel (%p200_p12) target bundleno = 349 (0x15d), region = 28  ;;  %s195_s9 = int_to_ptr.vmem [resolvable:$true] %s194_s9 }
  0x18   : > { %605 = dma.hbm_to_vmem [thread:$0]  (!%p600_p9), %s193_s7, 128, %s195_s9, %s177_s15  }
  0x19   : > { %s205_s17 = sand.u32 (!%p200_p12), 1, %s772_s10  }
  0x1a   : > { %s587_s18 = sshll.u32 (!%p200_p12), %s205_s17, 3  ;;  %s206_s19 = scalar_lea.sflag (!%p200_p12), [#allocation4], %s205_s17 }
  0x1b   : > { %s209_s25 = scalar_lea.vmem (!%p200_p12), [#allocation3], %s587_s18 }
  0x1c   : > { %759 = dma.done.wait (%p849_p7), %s206_s19, 128  }
  0x1d   : > { %761 = vsyncadd (%p849_p7), %s206_s19, 4294967168  ;;  %s216_s23 = scalar_lea.sflag [#allocation6], %s205_s17  ;;  %s874_s24 = scalar_lea.vmem [#allocation5], %s587_s18 }
  0x1e   : > { %763 = dma.done.wait (%p849_p7), %s216_s23, 128  }
  0x1f   : > { %765 = vsyncadd (%p849_p7), %s216_s23, 4294967168  ;;  %v265_v0 = vlaneseq  ;;  %v790_v2 = vmov 0.0   ;;  %v270_v3 = vld [vmem:[%s209_s25] sm:$0xff]  ;;  %vm278_vm1 = vcmask 1043456   ;;  %v271_v25 = vld [vmem:[%s874_s24] sm:$0xff]  ;;  %vm434_vm2 = vcmask 1040384  }
  0x20   : > { %273 = vst [vmem:[#allocation1] ss:$2 sm:$0xff] %v270_v3  ;;  %p255_p13 = scmp.lt.s32.totalorder %s780_s12, 1  ;;  %vm465_vm3 = vcmask 0  }
  0x21   : > { %vm880_vm0 = vcmp.lt.s32.totalorder %v265_v0, 256 }
  0x22   : > { %269 = vst.msk [vmem:[#allocation2] sm:$0x3] %vm880_vm0, %v790_v2  ;;  %s942_s12 = smov (!%p255_p13, %s780_s12), 1 }
  0x23   : > { %s260_s26 = scalar_lea.vmem %s929_s2, %s942_s12 }
  0x27   : > { %v274_v4 = vld.sshfl [vmem:[#allocation1] sm:$0xff pattern:$0x75316420]  ;;  %v275_v5 = vld.sshfl [vmem:[#allocation1 + $0x8] sm:$0xff pattern:$0x75316420] }
  0x28   : > { %v279_v6 = vsel %vm278_vm1, %v274_v4, -inf  ;;  %v286_v7 = vsel %vm278_vm1, %v275_v5, -inf }
  0x29   : > { %v280_v8 = vrot.slane %v279_v6, 4  ;;  %v287_v9 = vrot.slane %v286_v7, 4 }
  0x2b   : > { %v281_v10 = vmax.f32 %v279_v6, %v280_v8  ;;  %v288_v11 = vmax.f32 %v286_v7, %v287_v9 }
  0x2d   : > { %v282_v12 = vrot.slane %v281_v10, 2  ;;  %v289_v13 = vrot.slane %v288_v11, 2 }
  0x2f   : > { %v283_v14 = vmax.f32 %v281_v10, %v282_v12  ;;  %v290_v15 = vmax.f32 %v288_v11, %v289_v13 }
  0x31   : > { %v284_v16 = vrot.slane %v283_v14, 1  ;;  %v291_v17 = vrot.slane %v290_v15, 1 }
  0x33   : > { %v285_v18 = vmax.f32 %v283_v14, %v284_v16  ;;  %v292_v19 = vmax.f32 %v290_v15, %v291_v17 }
  0x35   : > { %v295_v20 = vrot.slane %v292_v19, 4 }
  0x37   : > { %v296_v21 = vsel %vm278_vm1, %v285_v18, %v295_v20 }
  0x38   : > { %v298_v22 = vsub.f32 %v270_v3, %v296_v21 }
  0x3a   : > { %v299_v23 = vmul.f32 1.442695, %v298_v22 }
  0x3c   : > { %656 = vpow2.f32 %v299_v23 }
  0x42   : > { %v657_v24 = vpop.eup %656 }
  0x43   : > { %302 = vst [vmem:[#allocation1] ss:$2 sm:$0xff] %v657_v24 }
  0x4a   : > { %v303_v26 = vld.sshfl [vmem:[#allocation1] sm:$0xff pattern:$0x75316420]  ;;  %v304_v27 = vld.sshfl [vmem:[#allocation1 + $0x8] sm:$0xff pattern:$0x75316420] }
  0x4b   : > { %v307_v28 = vsel %vm278_vm1, %v303_v26, 0.0  ;;  %v314_v29 = vsel %vm278_vm1, %v304_v27, 0.0  ;;  %330 = vst [vmem:[#allocation1] ss:$2 sm:$0xff] %v271_v25 }
  0x4c   : > { %v308_v30 = vrot.slane %v307_v28, 4  ;;  %v315_v31 = vrot.slane %v314_v29, 4 }
  0x4e   : > { %v309_v32 = vadd.f32 %v308_v30, %v307_v28  ;;  %v316_v33 = vadd.f32 %v315_v31, %v314_v29 }
  0x50   : > { %v310_v34 = vrot.slane %v309_v32, 2  ;;  %v317_v35 = vrot.slane %v316_v33, 2 }
  0x52   : > { %v311_v36 = vadd.f32 %v310_v34, %v309_v32  ;;  %v318_v37 = vadd.f32 %v317_v35, %v316_v33  ;;  %v331_v38 = vld.sshfl [vmem:[#allocation1] sm:$0xff pattern:$0x75316420]  ;;  %v332_v39 = vld.sshfl [vmem:[#allocation1 + $0x8] sm:$0xff pattern:$0x75316420] }
  0x53   : > { %v335_v40 = vsel %vm278_vm1, %v331_v38, -inf  ;;  %v342_v41 = vsel %vm278_vm1, %v332_v39, -inf }
  0x54   : > { %v312_v42 = vrot.slane %v311_v36, 1  ;;  %v319_v43 = vrot.slane %v318_v37, 1  ;;  %v336_v44 = vrot.slane %v335_v40, 4  ;;  %v343_v45 = vrot.slane %v342_v41, 4 }
  0x56   : > { %v313_v46 = vadd.f32 %v312_v42, %v311_v36  ;;  %v320_v47 = vadd.f32 %v319_v43, %v318_v37  ;;  %v337_v48 = vmax.f32 %v335_v40, %v336_v44  ;;  %v344_v49 = vmax.f32 %v342_v41, %v343_v45 }
  0x58   : > { %658 = vrcp.f32 %v313_v46  ;;  %v338_v50 = vrot.slane %v337_v48, 2  ;;  %v345_v51 = vrot.slane %v344_v49, 2 }
  0x59   : > { %660 = vrcp.f32 %v320_v47 }
  0x5a   : > { %v339_v52 = vmax.f32 %v337_v48, %v338_v50  ;;  %v346_v53 = vmax.f32 %v344_v49, %v345_v51 }
  0x5c   : > { %v340_v54 = vrot.slane %v339_v52, 1  ;;  %v347_v55 = vrot.slane %v346_v53, 1 }
  0x5e   : > { %v659_v56 = vpop.eup %658  ;;  %v341_v57 = vmax.f32 %v339_v52, %v340_v54  ;;  %v348_v58 = vmax.f32 %v346_v53, %v347_v55 }
  0x5f   : > { %v661_v59 = vpop.eup %660 }
  0x60   : > { %v325_v60 = vrot.slane %v661_v59, 4  ;;  %v351_v61 = vrot.slane %v348_v58, 4 }
  0x62   : > { %v326_v62 = vsel %vm278_vm1, %v659_v56, %v325_v60  ;;  %v352_v63 = vsel %vm278_vm1, %v341_v57, %v351_v61 }
  0x63   : > { %v354_v0 = vsub.f32 %v271_v25, %v352_v63  ;;  %v328_v2 = vmul.f32 %v657_v24, %v326_v62 }
  0x65   : > { %v355_v3 = vmul.f32 1.442695, %v354_v0  ;;  %v377_v4 = vmul.f32 1.442695, %v328_v2 }
  0x67   : > { %662 = vpow2.f32 %v355_v3  ;;  %v430_v3 = vld [vmem:[#allocation2] sm:$0x3] }
  0x68   : > { %664 = vpow2.f32 %v377_v4 }
  0x6d   : > { %v663_v5 = vpop.eup %662 }
  0x6e   : > { %358 = vst [vmem:[#allocation1] ss:$2 sm:$0xff] %v663_v5  ;;  %v665_v6 = vpop.eup %664  ;;  %v403_v15 = vmul.f32 %v663_v5, %v328_v2 }
  0x75   : > { %v359_v7 = vld.sshfl [vmem:[#allocation1] sm:$0xff pattern:$0x75316420]  ;;  %v360_v8 = vld.sshfl [vmem:[#allocation1 + $0x8] sm:$0xff pattern:$0x75316420] }
  0x76   : > { %v363_v9 = vsel %vm278_vm1, %v359_v7, 0.0  ;;  %v370_v10 = vsel %vm278_vm1, %v360_v8, 0.0  ;;  %380 = vst [vmem:[#allocation1] ss:$2 sm:$0xff] %v665_v6 }
  0x77   : > { %v364_v11 = vrot.slane %v363_v9, 4  ;;  %v371_v12 = vrot.slane %v370_v10, 4 }
  0x79   : > { %v365_v13 = vadd.f32 %v364_v11, %v363_v9  ;;  %v372_v14 = vadd.f32 %v371_v12, %v370_v10 }
  0x7b   : > { %v366_v16 = vrot.slane %v365_v13, 2  ;;  %v373_v17 = vrot.slane %v372_v14, 2 }
  0x7d   : > { %v367_v18 = vadd.f32 %v366_v16, %v365_v13  ;;  %v381_v19 = vld.sshfl [vmem:[#allocation1] sm:$0xff pattern:$0x75316420]  ;;  %v382_v20 = vld.sshfl [vmem:[#allocation1 + $0x8] sm:$0xff pattern:$0x75316420]  ;;  %v374_v21 = vadd.f32 %v373_v17, %v372_v14 }
  0x7e   : > { %v385_v22 = vsel %vm278_vm1, %v381_v19, 0.0  ;;  %v392_v23 = vsel %vm278_vm1, %v382_v20, 0.0  ;;  %405 = vst [vmem:[#allocation1] ss:$2 sm:$0xff] %v403_v15 }
  0x7f   : > { %v386_v24 = vrot.slane %v385_v22, 4  ;;  %v393_v25 = vrot.slane %v392_v23, 4  ;;  %v368_v26 = vrot.slane %v367_v18, 1  ;;  %v375_v29 = vrot.slane %v374_v21, 1 }
  0x81   : > { %v387_v27 = vadd.f32 %v386_v24, %v385_v22  ;;  %v394_v28 = vadd.f32 %v393_v25, %v392_v23  ;;  %v369_v32 = vadd.f32 %v368_v26, %v367_v18  ;;  %v376_v37 = vadd.f32 %v375_v29, %v374_v21 }
  0x83   : > { %v388_v30 = vrot.slane %v387_v27, 2  ;;  %v395_v31 = vrot.slane %v394_v28, 2  ;;  %666 = vrcp.f32 %v369_v32 }
  0x84   : > { %668 = vrcp.f32 %v376_v37 }
  0x85   : > { %v389_v33 = vadd.f32 %v388_v30, %v387_v27  ;;  %v396_v34 = vadd.f32 %v395_v31, %v394_v28  ;;  %v406_v35 = vld.sshfl [vmem:[#allocation1] sm:$0xff pattern:$0x75316420]  ;;  %v407_v36 = vld.sshfl [vmem:[#allocation1 + $0x8] sm:$0xff pattern:$0x75316420] }
  0x86   : > { %v410_v38 = vsel %vm278_vm1, %v406_v35, 0.0  ;;  %v417_v39 = vsel %vm278_vm1, %v407_v36, 0.0 }
  0x87   : > { %v390_v40 = vrot.slane %v389_v33, 1  ;;  %v397_v41 = vrot.slane %v396_v34, 1  ;;  %v411_v42 = vrot.slane %v410_v38, 4  ;;  %v418_v43 = vrot.slane %v417_v39, 4 }
  0x89   : > { %v391_v44 = vadd.f32 %v390_v40, %v389_v33  ;;  %v398_v45 = vadd.f32 %v397_v41, %v396_v34  ;;  %v412_v46 = vadd.f32 %v411_v42, %v410_v38  ;;  %v419_v47 = vadd.f32 %v418_v43, %v417_v39  ;;  %v667_v52 = vpop.eup %666 }
  0x8a   : > { %v669_v55 = vpop.eup %668 }
  0x8b   : > { %670 = vlog2.f32 %v391_v44  ;;  %v413_v48 = vrot.slane %v412_v46, 2  ;;  %v420_v49 = vrot.slane %v419_v47, 2 }
  0x8c   : > { %672 = vlog2.f32 %v398_v45 }
  0x8d   : > { %v414_v50 = vadd.f32 %v413_v48, %v412_v46  ;;  %v421_v51 = vadd.f32 %v420_v49, %v419_v47 }
  0x8f   : > { %v415_v53 = vrot.slane %v414_v50, 1  ;;  %v422_v54 = vrot.slane %v421_v51, 1 }
  0x91   : > { %v671_v56 = vpop.eup %670  ;;  %v416_v57 = vadd.f32 %v415_v53, %v414_v50  ;;  %v423_v58 = vadd.f32 %v422_v54, %v421_v51 }
  0x92   : > { %v673_v59 = vpop.eup %672  ;;  %v400_v60 = vmul.f32 0.6931472, %v671_v56 }
  0x93   : > { %v402_v61 = vmul.f32 0.6931472, %v673_v59  ;;  %v426_v62 = vmul.f32 %v667_v52, %v416_v57  ;;  %v427_v63 = vmul.f32 %v669_v55, %v423_v58 }
  0x95   : > { %v428_v0 = vsub.f32 %v400_v60, %v426_v62  ;;  %v429_v2 = vsub.f32 %v402_v61, %v427_v63 }
  0x97   : > { %v433_v4 = vrot.slane %v429_v2, 7 }
  0x99   : > { %v435_v5 = vsel %vm434_vm2, %v428_v0, %v433_v4 }
  0x9a   : > { %v437_v6 = vadd.f32 %v435_v5, %v430_v3 }
  0x9c   : > { %442 = vst.msk [vmem:[#allocation2] sm:$0x3] %vm880_vm0, %v437_v6 }
  0xa3   : > { %v446_v7 = vld [vmem:[#allocation2] sm:$0x3] }
  0xa4   : > { %v448_v8 = vperm.slane %v446_v7, 0  ;;  %v449_v9 = vperm.slane %v446_v7, 1 }
  0xa6   : > { %v452_v10 = vsel %vm434_vm2, %v448_v8, 0.0  ;;  %v453_v11 = vsel %vm434_vm2, %v449_v9, 0.0 }
  0xa7   : > { %v454_v12 = vadd.f32 %v453_v11, %v452_v10 }
  0xa9   : > { %455 = vadd.xlane.f32.xlu0 %v454_v12 }
 0x11c   : > { %v456_v13 = vpop.xlane.xlu0 %455 }
 0x11d   : > { %v457_v14 = vrot.slane %v456_v13, 4 }
 0x11f   : > { %v458_v15 = vadd.f32 %v457_v14, %v456_v13 }
 0x121   : > { %v459_v16 = vrot.slane %v458_v15, 2 }
 0x123   : > { %v460_v17 = vadd.f32 %v459_v16, %v458_v15 }
 0x125   : > { %v461_v18 = vrot.slane %v460_v17, 1 }
 0x127   : > { %v462_v19 = vadd.f32 %v461_v18, %v460_v17 }
 0x129   : > { %593 = vpush %v462_v19 }
 0x15a   : > { %s594_s27 = spop %593 }
 0x15b   : > { %v464_v1 = vstv %s594_s27 }
 0x15c   : > { %466 = vst.msk [vmem:[%s260_s26] sm:$0x1] %vm465_vm3, %v464_v1 }
 0x15d PF: > { %s18_s14 = sadd.s32 1, %s788_s14   ;;  %s934_s9 = smov %s772_s10 }
 0x15e   : > { %p15_p0 = scmp.ge.s32.totalorder %s18_s14, 4   ;;  %s935_s10 = smov %s776_s11 }
 0x15f   : > { %s936_s11 = smov %s855_s21  ;;  %s937_s12 = smov %s784_s13 }
 0x160   : > { %s938_s13 = smov %s940_s16  ;;  %17 = sbr.rel (!%p15_p0) target bundleno = 6 (0x6), region = 89 }
 0x165   :  { %490 = vsyncpa [#allocation4], 1 }
 0x166   :  { %492 = vsyncpa [#allocation4 + $0x1], 1 }
 0x167   :  { %493 = vsyncpa [#allocation6], 1 }
 0x168   :  { %495 = vsyncpa [#allocation6 + $0x1], 1 }

</bundles_post_ra>
